<compile_context>
chip_gen: v5e
topology: v5e:2x2
jax: 0.10.0
libtpu: 0.0.40
codegen_flags: <defaults>
</compile_context>

<pallas_src>
import jax
import jax.numpy as jnp
from jax.experimental import pallas as pl
from jax.experimental.pallas import tpu as pltpu


_VMEM_TILE_BUDGET = 32 * 1024 * 1024   # bytes devoted to pipelined blocks (safe on v5e/v6e/v7x)
_VMEM_LIMIT = 48 * 1024 * 1024         # scoped VMEM limit handed to Mosaic (< 64 MiB v7x physical)


def _round_up(x, m):
    return ((x + m - 1) // m) * m


def _choose_tiles(B, LD, e_itemsize, w_itemsize, budget=_VMEM_TILE_BUDGET):
    """Pick (TB, TLD) block dims for the flattened (B, L*D) problem.

    TPU (8,128) block rule on the last two dims:
      * TB  must be a multiple of 8   or equal to B.
      * TLD must be a multiple of 128 or equal to LD.
    """
    def step_bytes(tb, tld):
        # double-buffered embs + out blocks, plus (double-buffered) pos/pad slabs
        return 4 * tb * tld * e_itemsize + 4 * tld * w_itemsize

    # Prefer full flat rows and as many batch rows per step as fit the budget.
    tb = B
    while tb > 8 and step_bytes(tb, LD) > budget:
        tb = _round_up(tb // 2, 8)
    if step_bytes(tb, LD) <= budget:
        tld = LD
        # If the whole problem would be a single block, split the flat axis so
        # the grid has >= 2 parallel steps (lets v7x's two TensorCores share it).
        if tb >= B and LD >= 256:
            tld = _round_up(pl.cdiv(LD, 2), 128)
        return tb, tld
    # Even the minimum row count is too wide: tile the flat axis instead.
    tb = B if B < 8 else 8
    tld = (budget // (4 * (tb * e_itemsize + w_itemsize))) // 128 * 128
    tld = max(128, tld)
    return tb, min(tld, LD)


def _pos_emb_kernel(thr_ref, embs_ref, posw_ref, padw_ref, out_ref):
    # thr_ref : (TB, 1)   int32  — seq_lengths[b] * D (flat-index threshold per row)
    # embs_ref: (TB, TLD)        — flat (L*D) slice of TB batch rows
    # posw_ref: (1, TLD)         — flat slice of emb_weight[1:L+1]  (positions 1..L)
    # padw_ref: (1, TLD)         — flat slice of emb_weight[0] tiled L times (pad row)
    # out_ref : (TB, TLD)
    tb, tld = out_ref.shape
    j = pl.program_id(1)
    # Global flat column index of every lane in this block (narrow per-row mask,
    # thresholds broadcast over lanes; pos/pad rows broadcast over sublanes).
    col = j * tld + jax.lax.broadcasted_iota(jnp.int32, (tb, tld), 1)
    mask = col < thr_ref[...]                                  # (TB, TLD)
    add = jnp.where(mask, posw_ref[...], padw_ref[...])        # (TB, TLD)
    out_ref[...] = embs_ref[...] + add.astype(out_ref.dtype)


def positional_embedding(embs, seq_lengths, emb_weight):
    """embs: (B, L, D); seq_lengths: (B,) int; emb_weight: (max_len+1, D)."""
    B, L, D = embs.shape
    if L + 1 > emb_weight.shape[0]:
        raise ValueError(
            f"sequence length {L} exceeds positional table size {emb_weight.shape[0] - 1}")
    if emb_weight.shape[1] != D:
        raise ValueError("d_model mismatch between embs and position table")
    LD = L * D

    # Flat, static table prep (hoist to weight-load time in a real model; these are
    # static slices/tiles of size L*D, small next to the 2*B*L*D main traffic).
    pos_flat = emb_weight[1:L + 1, :].reshape(1, LD)            # rows 1..L, flattened
    pad_flat = jnp.tile(emb_weight[0:1, :], (1, L))             # row 0 tiled L times
    thr = (seq_lengths.astype(jnp.int32) * D).reshape(B, 1)     # flat mask thresholds
    embs_flat = embs.reshape(B, LD)                             # free layout view

    TB, TLD = _choose_tiles(B, LD, embs.dtype.itemsize, emb_weight.dtype.itemsize)
    grid = (pl.cdiv(B, TB), pl.cdiv(LD, TLD))

    cost = pl.CostEstimate(
        flops=B * LD,
        transcendentals=0,
        bytes_accessed=(2 * B * LD + 2 * LD) * embs.dtype.itemsize + B * 4,
    )

    out_flat = pl.pallas_call(
        _pos_emb_kernel,
        out_shape=jax.ShapeDtypeStruct((B, LD), embs.dtype),
        grid_spec=pltpu.PrefetchScalarGridSpec(
            num_scalar_prefetch=0,
            grid=grid,
            in_specs=[
                pl.BlockSpec((TB, 1), lambda i, j: (i, 0)),      # thresholds
                pl.BlockSpec((TB, TLD), lambda i, j: (i, j)),    # embs (flat)
                pl.BlockSpec((1, TLD), lambda i, j: (0, j)),     # position rows (flat)
                pl.BlockSpec((1, TLD), lambda i, j: (0, j)),     # pad row tiled (flat)
            ],
            out_specs=pl.BlockSpec((TB, TLD), lambda i, j: (i, j)),
        ),
        compiler_params=pltpu.CompilerParams(
            dimension_semantics=("parallel", "parallel"),
            vmem_limit_bytes=_VMEM_LIMIT,
        ),
        cost_estimate=cost,
    )(thr, embs_flat, pos_flat, pad_flat)

    return out_flat.reshape(B, L, D)


if __name__ == "__main__":
    key = jax.random.PRNGKey(0)
    k_emb, k_w = jax.random.split(key)

    # Small shapes consistent with the module's forward.
    B, L, D = 2, 8, 32
    max_len = 64  # module default is 2047; kept small for the demo table

    embs = jax.random.normal(k_emb, (B, L, D), dtype=jnp.float32)
    seq_lengths = jnp.array([8, 5], dtype=jnp.int32)

    # Deterministic parameter init matching torch.nn.init.uniform_(w, -0.01, 0.01).
    emb_weight = jax.random.uniform(
        k_w, (max_len + 1, D), dtype=jnp.float32, minval=-0.01, maxval=0.01)

    out = jax.block_until_ready(positional_embedding(embs, seq_lengths, emb_weight))

    # Pure-JAX reference check.
    pos_ids = jnp.arange(1, L + 1)[None, :]                           # (1, L)
    pos_ids = jnp.where(pos_ids <= seq_lengths[:, None], pos_ids, 0)  # (B, L)
    ref = embs + emb_weight[pos_ids]
    assert jnp.allclose(out, ref, atol=1e-6), "mismatch vs reference"

    print("KERNEL_OK")
</pallas_src>

<mosaic_0001>
module attributes {stable_mosaic.version = 11 : i64} {
  func.func @_pos_emb_kernel(%arg0: i32, %arg1: i32, %arg2: memref<2x1xi32, #tpu.memory_space<vmem>>, %arg3: memref<2x128xf32, #tpu.memory_space<vmem>>, %arg4: memref<1x128xf32, #tpu.memory_space<vmem>>, %arg5: memref<1x128xf32, #tpu.memory_space<vmem>>, %arg6: memref<2x128xf32, #tpu.memory_space<vmem>>) attributes {dimension_semantics = [#tpu.dimension_semantics<parallel>, #tpu.dimension_semantics<parallel>], iteration_bounds = array<i64: 1, 2>, scalar_prefetch = 0 : i64, scratch_operands = 0 : i64, tpu.core_type = #tpu.core_type<tc>, window_params = [{transform_indices = @transform_0, window_bounds = array<i64: 2, 1>}, {transform_indices = @transform_1, window_bounds = array<i64: 2, 128>}, {transform_indices = @transform_2, window_bounds = array<i64: 1, 128>}, {transform_indices = @transform_3, window_bounds = array<i64: 1, 128>}, {transform_indices = @transform_4, window_bounds = array<i64: 2, 128>}]} {
    %c128_i32 = arith.constant 128 : i32
    %0 = arith.muli %arg1, %c128_i32 : i32
    %1 = tpu.iota {dimensions = array<i32: 1>} : vector<2x128xi32>
    %2 = vector.broadcast %0 : i32 to vector<2x128xi32>
    %3 = arith.addi %2, %1 : vector<2x128xi32>
    %c0 = arith.constant 0 : index
    %c0_0 = arith.constant 0 : index
    %4 = vector.load %arg2[%c0, %c0_0] : memref<2x1xi32, #tpu.memory_space<vmem>>, vector<2x1xi32>
    %5 = vector.broadcast %4 : vector<2x1xi32> to vector<2x128xi32>
    %6 = arith.cmpi slt, %3, %5 : vector<2x128xi32>
    %c0_1 = arith.constant 0 : index
    %c0_2 = arith.constant 0 : index
    %7 = vector.load %arg4[%c0_1, %c0_2] : memref<1x128xf32, #tpu.memory_space<vmem>>, vector<1x128xf32>
    %c0_3 = arith.constant 0 : index
    %c0_4 = arith.constant 0 : index
    %8 = vector.load %arg5[%c0_3, %c0_4] : memref<1x128xf32, #tpu.memory_space<vmem>>, vector<1x128xf32>
    %9 = vector.shape_cast %7 : vector<1x128xf32> to vector<1x128xf32>
    %10 = vector.broadcast %9 : vector<1x128xf32> to vector<2x128xf32>
    %11 = vector.shape_cast %8 : vector<1x128xf32> to vector<1x128xf32>
    %12 = vector.broadcast %11 : vector<1x128xf32> to vector<2x128xf32>
    %13 = arith.select %6, %10, %12 : vector<2x128xi1>, vector<2x128xf32>
    %c0_5 = arith.constant 0 : index
    %c0_6 = arith.constant 0 : index
    %14 = vector.load %arg3[%c0_5, %c0_6] : memref<2x128xf32, #tpu.memory_space<vmem>>, vector<2x128xf32>
    %15 = arith.addf %14, %13 : vector<2x128xf32>
    %c0_7 = arith.constant 0 : index
    %c0_8 = arith.constant 0 : index
    %16 = vector.load %arg6[%c0_7, %c0_8] : memref<2x128xf32, #tpu.memory_space<vmem>>, vector<2x128xf32>
    tpu.vector_store %arg6[%c0_7, %c0_8], %15 {strides = array<i32>} : memref<2x128xf32, #tpu.memory_space<vmem>>, vector<2x128xf32>,
    return
  }
  func.func @transform_0(%arg0: i32, %arg1: i32) -> (i32, i32) {
    %c0_i32 = arith.constant 0 : i32
    %c0_i32_0 = arith.constant 0 : i32
    return %arg0, %c0_i32 : i32, i32
  }
  func.func @transform_1(%arg0: i32, %arg1: i32) -> (i32, i32) {
    %c0_i32 = arith.constant 0 : i32
    return %arg0, %arg1 : i32, i32
  }
  func.func @transform_2(%arg0: i32, %arg1: i32) -> (i32, i32) {
    %c0_i32 = arith.constant 0 : i32
    %c0_i32_0 = arith.constant 0 : i32
    return %c0_i32, %arg1 : i32, i32
  }
  func.func @transform_3(%arg0: i32, %arg1: i32) -> (i32, i32) {
    %c0_i32 = arith.constant 0 : i32
    %c0_i32_0 = arith.constant 0 : i32
    return %c0_i32, %arg1 : i32, i32
  }
  func.func @transform_4(%arg0: i32, %arg1: i32) -> (i32, i32) {
    %c0_i32 = arith.constant 0 : i32
    return %arg0, %arg1 : i32, i32
  }
}

</mosaic_0001>

<bundles_post_ra>
// kernel: tpu_custom_call.1
= control target key start
LH: loop header
LB: loop body
LE: loop exit
PB: predicated region body
PF: predicated region fallthrough
CT: control target
= control target key end

     0   :  { %9 = vsyncpa [#allocation3], 0  ;;  %s786_s0 = inlined_call_operand.vmem [shape: s32[2,1], index: 0, kind: input, shape index: {}]   ;;  %s787_s1 = inlined_call_operand.hbm [shape: f32[2,256], index: 1, kind: input, shape index: {}]   ;;  %s788_s2 = inlined_call_operand.vmem [shape: f32[1,256], index: 2, kind: input, shape index: {}]   ;;  %s789_s3 = inlined_call_operand.vmem [shape: f32[1,256], index: 3, kind: input, shape index: {}]   ;;  %s790_s4 = inlined_call_operand.hbm [shape: f32[2,256], index: 4, kind: output, shape index: {}]  }
   0x1   :  { %11 = vsyncpa [#allocation3 + $0x1], 0 }
   0x2   :  { %12 = vsyncpa [#allocation4], 0 }
   0x3   :  { %14 = vsyncpa [#allocation4 + $0x1], 0  ;;  %s654_s15 = smov 0   ;;  %s656_s16 = smov 0  }
   0x4   :  { %s658_s17 = smov 0   ;;  %s660_s18 = smov 0  }
   0x5   :  { %s662_s19 = smov 0   ;;  %s664_s20 = smov 0  }
   0x6 LB: > { %s433_s21 = sadd.s32 4294967295, %s626_s20   ;;  %s434_s22 = sadd.s32 4294967294, %s626_s20   ;;  %s626_s20 = sphi %s664_s20, %s20_s20   ;;  %s622_s19 = sphi %s662_s19, %s799_s19   ;;  %s618_s18 = sphi %s660_s18, %s798_s18   ;;  %s614_s17 = sphi %s658_s17, %s797_s17   ;;  %s610_s16 = sphi %s656_s16, %s796_s16   ;;  %s606_s15 = sphi %s654_s15, %s795_s15  }
   0x7   : > { %s29_s23 = sadd.s32 1, %s622_s19  ;;  %s67_s24 = sadd.s32 1, %s614_s17 }
   0x8   : > { %p30_p0 = scmp.ge.s32.totalorder %s29_s23, 2  ;;  %p74_p1 = scmp.ne.s32.totalorder %s614_s17, %s610_s16 }
   0x9   : > { %p75_p2 = scmp.eq.s32.totalorder %s626_s20, 0  ;;  %p80_p3 = scmp.ne.s32.totalorder %s610_s16, %s606_s15 }
   0xa   : > { %s801_s23 = smov (%p30_p0, %s29_s23), 0  ;;  %p81_p5 = scmp.eq.s32.totalorder %s433_s21, 0 }
   0xb   : > { %p695_p4 = por %p75_p2, %p74_p1  ;;  %s63_s26 = ssub.s32 %s622_s19, %s801_s23 }
   0xc   : > { %p158_p6 = scmp.eq.s32.totalorder %s433_s21, 1  ;;  %p65_p7 = scmp.eq.s32.totalorder %s63_s26, 0 }
   0xd   : > { %p701_p8 = por %p81_p5, %p80_p3  ;;  %p164_p10 = scmp.eq.s32.totalorder %s434_s22, 1 }
   0xe   : > { %p705_p9 = por %p158_p6, %p74_p1  ;;  %p437_p12 = scmp.ge.s32.totalorder %s626_s20, 2 }
   0xf   : > { %s710_s29 = scalar_select %p65_p7, %s614_s17, %s67_s24  }
  0x10   : > { %p712_p11 = por %p164_p10, %p80_p3  ;;  %p460_p13 = scmp.lt.s32.totalorder %s626_s20, 2 }
  0x11   : > { %s191_s5 = sand.u32 1, %s614_s17   ;;  %s439_s7 = sshll.u32 %s622_s19, 1 }
  0x12   : > { %s438_s6 = sshll.u32 %s191_s5, 1  ;;  %s201_s10 = scalar_lea.hbm %s787_s1, %s439_s7 }
  0x13   : > { %s195_s11 = scalar_lea.vmem [#allocation2], %s438_s6  ;;  %s203_s13 = sshll.u32 %s201_s10, 4  ;;  %s204_s13 = int_to_ptr.hbm [resolvable:$true] %s203_s13 }
  0x14   : > { %s205_s12 = sshll.u32 %s195_s11, 4  ;;  %p453_p0 = pnand %p460_p13, %p695_p4  ;;  %s206_s12 = int_to_ptr.vmem [resolvable:$true] %s205_s12 }
  0x15   : > { %p440_p1 = scmp.ge.s32.totalorder %s626_s20, 1  ;;  %p222_p2 = scmp.lt.s32.totalorder %s626_s20, 3 }
  0x16   : > { %s192_s14 = scalar_lea.sflag [#allocation3], %s191_s5 }
  0x17   : > { %455 = dma.hbm_to_vmem [thread:$0]  (!%p453_p0), %s204_s13, 32, %s206_s12, %s192_s14  }
  0x18   : > { %p223_p3 = pnand %p440_p1, %p222_p2 }
  0x19   : > { %s728_s21 = sand.u32 (!%p223_p3), 1, %s610_s16  }
  0x1a   : > { %226 = sbr.rel (%p223_p3) target bundleno = 156 (0x9c), region = 36  ;;  %s441_s22 = sshll.u32 (!%p223_p3), %s728_s21, 1 }
  0x1b   : > { %s229_s24 = scalar_lea.sflag (!%p223_p3), [#allocation3], %s728_s21  ;;  %s232_s26 = scalar_lea.vmem (!%p223_p3), [#allocation2], %s441_s22 }
  0x1f   : > { %597 = dma.done.wait (%p701_p8), %s229_s24, 32  }
  0x20   : > { %599 = vsyncadd (%p701_p8), %s229_s24, 4294967264  ;;  %p272_p4 = scmp.lt.s32.totalorder %s618_s18, 1  ;;  %v628_v0 = vmov 0   ;;  %v283_v1 = vld [vmem:[%s786_s0] sm:$0x3]  ;;  %v279_v2 = vlaneseq  ;;  %s443_s27 = sshll.u32 %s618_s18, 7 }
  0x21   : > { %511 = vset.pattern.permute.xlu0 %v628_v0  ;;  %v281_v4 = vstv %s443_s27  ;;  %s445_s13 = sshll.u32 %s618_s18, 1  ;;  %v297_v8 = vld [vmem:[%s232_s26] sm:$0x3] }
  0x22   : > { %s273_s25 = scalar_select %p272_p4, %s618_s18, 1  ;;  %285 = vperm.xlu0 %511, %v283_v1   ;;  %v280_v3 = vand.u32 127, %v279_v2 }
  0x23   : > { %s313_s5 = scalar_lea.hbm %s790_s4, %s445_s13  ;;  %s301_s18 = scalar_lea.sflag [#allocation4], %s728_s21 }
  0x24   : > { %s274_s7 = scalar_lea.vmem %s788_s2, %s273_s25  ;;  %s277_s10 = scalar_lea.vmem %s789_s3, %s273_s25  ;;  %v282_v5 = vadd.s32 %v281_v4, %v280_v3 }
  0x25   : > { %v512_v6 = vld [vmem:[%s274_s7] ss:$0 sm:$0xff]  ;;  %s267_s25 = scalar_lea.vmem [#allocation5], %s441_s22  ;;  %s317_s8 = sshll.u32 %s313_s5, 4  ;;  %s318_s8 = int_to_ptr.hbm [resolvable:$true] %s317_s8 }
  0x26   : > { %v513_v7 = vld [vmem:[%s277_s10] ss:$0 sm:$0xff]  ;;  %s315_s6 = sshll.u32 %s267_s25, 4  ;;  %s558_s9 = sshra.s32 %s318_s8, 4  ;;  %s316_s6 = int_to_ptr.vmem [resolvable:$true] %s315_s6  ;;  %s559_s9 = int_to_ptr.hbm [resolvable:$true] %s558_s9 }
  0x27   : > { %s560_s11 = scalar_lea.hbm %s559_s9, 2  ;;  %s564_s22 = scalar_lea.hbm %s790_s4, 4 }
  0x28   : > { %p561_p5 = scmp.ne.s32.totalorder %s559_s9, %s560_s11  ;;  %p565_p8 = scmp.lt.s32.totalorder %s559_s9, %s790_s4 }
  0x29   : > { %p566_p10 = scmp.lt.s32.totalorder %s564_s22, %s560_s11 }
  0x2a   : > { %p562_p6 = pnand %p561_p5, %p705_p9 }
  0x2b   : > { %p567_p13 = por %p566_p10, %p565_p8 }
  0x2c   : > { %p563_p7 = pneg %p562_p6 }
  0x2e   : > { %p568_p0 = pnand %p567_p13, %p563_p7 }
  0x94   : > { %v286_v9 = vpop.permute.xlu0 %285 }
  0x95   : > { %vm287_vm0 = vcmp.lt.s32.totalorder %v282_v5, %v286_v9 }
  0x96   : > { %v296_v10 = vsel %vm287_vm0, %v512_v6, %v513_v7 }
  0x97   : > { %v298_v11 = vadd.f32 %v297_v8, %v296_v10 }
  0x99   : > { %299 = vst [vmem:[%s267_s25] sm:$0x3] %v298_v11 }
  0x9a   : > { %571 = shalt.err (!%p568_p0)
}
  0x9b   : > { %450 = dma.vmem_to_hbm [thread:$0]  (%p705_p9), %s316_s6, 32, %s318_s8, %s301_s18  }
  0x9c PF: > { %s329_s21 = sand.u32 1, %s606_s15   ;;  %p457_p1 = pnand %p437_p12, %p712_p11 }
  0x9d   : > { %s330_s27 = scalar_lea.sflag [#allocation4], %s329_s21 }
  0x9e   : > { %p458_p2 = pneg %p457_p1 }
  0xa0   : > { %601 = dma.done.wait (%p458_p2), %s330_s27, 32  }
  0xa1   : > { %603 = vsyncadd (%p458_p2), %s330_s27, 4294967264  ;;  %s20_s20 = sadd.s32 1, %s626_s20   ;;  %s795_s15 = smov %s610_s16 }
  0xa2   : > { %p17_p3 = scmp.ge.s32.totalorder %s20_s20, 4   ;;  %s796_s16 = smov %s614_s17 }
  0xa3   : > { %s797_s17 = smov %s710_s29  ;;  %s798_s18 = smov %s622_s19 }
  0xa4   : > { %s799_s19 = smov %s801_s23  ;;  %19 = sbr.rel (!%p17_p3) target bundleno = 6 (0x6), region = 90 }
  0xa9   :  { %336 = vsyncpa [#allocation3], 1 }
  0xaa   :  { %338 = vsyncpa [#allocation3 + $0x1], 1 }
  0xab   :  { %339 = vsyncpa [#allocation4], 1 }
  0xac   :  { %341 = vsyncpa [#allocation4 + $0x1], 1 }

</bundles_post_ra>
